<compile_context>
chip_gen: v6e
topology: v6e:2x2x1
jax: 0.10.0
libtpu: 0.0.40
codegen_flags: <defaults>
</compile_context>

<pallas_src>
import jax
import jax.numpy as jnp
from jax import lax
from jax.experimental import pallas as pl
from jax.experimental.pallas import tpu as pltpu


def _round_up(x, m):
    return (x + m - 1) // m * m


def _pick_tile_k(kp, max_tk, granule=128):
    """Largest multiple of `granule` that divides kp and is <= max_tk."""
    q = kp // granule
    cap = max(1, min(max_tk // granule, q))
    for d in range(cap, 0, -1):
        if q % d == 0:
            return d * granule
    return granule


def _vmem_budget_bytes():
    # Per-generation scoped-VMEM budget: ~3/4 of physical capacity
    # (<=48 MiB on v7x's 64 MiB/TC, ~96 MiB on v5e/v6e's 128 MiB).
    try:
        cap = int(pltpu.get_tpu_info().vmem_capacity_bytes)
    except Exception:
        cap = 64 << 20          # conservative fallback (v7x per-TC VMEM)
    return cap * 3 // 4


def _linear_kernel(x_ref, w_ref, b_ref, o_ref, acc_ref):
    # x_ref:   (tm, tk)  activation tile
    # w_ref:   (tn, tk)  weight rows in native PyTorch [N, K] layout
    # b_ref:   (1, tn)   bias tile
    # o_ref:   (tm, tn)  output tile
    # acc_ref: (tm, tn)  f32 accumulator (VMEM scratch), carried over K steps
    k = pl.program_id(2)

    @pl.when(k == 0)
    def _():
        acc_ref[...] = jnp.zeros_like(acc_ref)

    # x @ w.T on the MXU (trans-B contraction; weight never transposed in
    # glue).  If the Mosaic dump ever shows an XLU transpose here, keep a
    # persistent [K, N] weight copy created once at init instead.
    acc_ref[...] += lax.dot_general(
        x_ref[...], w_ref[...],
        dimension_numbers=(((1,), (1,)), ((), ())),
        preferred_element_type=jnp.float32,
    )

    @pl.when(k == pl.num_programs(2) - 1)
    def _():
        o_ref[...] = (acc_ref[...] + b_ref[...].astype(jnp.float32)
                      ).astype(o_ref.dtype)


def generator_forward(x, weight, bias, *, tile_m=256, tile_n=1024, tile_k=2048):
    """y = x @ weight.T + bias  (matches torch.nn.Linear forward).

    x:      [B, T, K]
    weight: [N, K]  PyTorch Linear layout.  For bf16 inference pass a weight
            that was cast to bf16 ONCE at init; this wrapper never casts or
            copies the (large) weight per call.  Accumulation is f32.
    bias:   [N]
    returns [B, T, N] in x.dtype
    """
    B, T, K = x.shape
    N, Kw = weight.shape
    assert Kw == K and bias.shape == (N,)

    M = B * T
    out_dtype = x.dtype

    x2d = x.reshape(M, K)
    w = weight
    if x2d.dtype != w.dtype:
        # x is small; the weight is never touched.
        x2d = x2d.astype(w.dtype)
    b2d = bias.reshape(1, N)

    x_item = jnp.dtype(x2d.dtype).itemsize
    w_item = jnp.dtype(w.dtype).itemsize
    b_item = jnp.dtype(b2d.dtype).itemsize
    out_item = jnp.dtype(out_dtype).itemsize

    # ---- tiling -----------------------------------------------------------
    # Only the contraction dim is ever zero-padded (required for correctness);
    # M/N boundary blocks stay partial and Pallas masks the output stores, so
    # the big [N, K] weight is never re-materialized for misaligned vocabs.
    Kp = _round_up(K, 128)
    if Kp != K:
        x2d = jnp.pad(x2d, ((0, 0), (0, Kp - K)))
        w = jnp.pad(w, ((0, 0), (0, Kp - K)))   # only if n_embed % 128 != 0

    sublane = {4: 8, 2: 16, 1: 32}.get(w_item, 8)   # packed-sublane multiple
    tm = _round_up(min(tile_m, M), sublane)
    tn = _round_up(min(tile_n, N), 128)
    tk = _pick_tile_k(Kp, min(tile_k, Kp))

    grid_m = pl.cdiv(M, tm)
    grid_n = pl.cdiv(N, tn)
    grid_k = Kp // tk

    # ---- grid ordering ----------------------------------------------------
    # K always innermost ("arbitrary").  Default: vocab axis first (weight
    # streamed once when K fits one tile; leading parallel axis stays
    # non-degenerate for v7x megacore at decode-sized M).  For prefill-sized
    # M, switch to M-first when re-reading x would cost more than re-reading
    # the weight.
    n_first = True
    if grid_k == 1 and grid_m > 1:
        w_bytes = N * Kp * w_item
        x_bytes = M * Kp * x_item
        n_first = (w_bytes + grid_n * x_bytes) <= (grid_m * w_bytes + x_bytes)

    if n_first:
        grid = (grid_n, grid_m, grid_k)
        x_spec = pl.BlockSpec((tm, tk), lambda n, m, k: (m, k))
        w_spec = pl.BlockSpec((tn, tk), lambda n, m, k: (n, k))
        b_spec = pl.BlockSpec((1, tn), lambda n, m, k: (0, n))
        o_spec = pl.BlockSpec((tm, tn), lambda n, m, k: (m, n))
    else:
        grid = (grid_m, grid_n, grid_k)
        x_spec = pl.BlockSpec((tm, tk), lambda m, n, k: (m, k))
        w_spec = pl.BlockSpec((tn, tk), lambda m, n, k: (n, k))
        b_spec = pl.BlockSpec((1, tn), lambda m, n, k: (0, n))
        o_spec = pl.BlockSpec((tm, tn), lambda m, n, k: (m, n))

    # ---- VMEM budget (per TPU generation) ---------------------------------
    per_step = (x_item * tm * tk + w_item * tn * tk
                + b_item * tn + out_item * tm * tn)
    vmem_need = 2 * per_step + 4 * tm * tn          # double-buffered + f32 acc
    vmem_limit = int(min(max(vmem_need * 5 // 4, 32 << 20), _vmem_budget_bytes()))

    cost = pl.CostEstimate(
        flops=2 * M * N * K,
        bytes_accessed=(M * K * x_item + N * K * w_item
                        + N * b_item + M * N * out_item),
        transcendentals=0,
    )

    out2d = pl.pallas_call(
        _linear_kernel,
        out_shape=jax.ShapeDtypeStruct((M, N), out_dtype),
        grid_spec=pltpu.PrefetchScalarGridSpec(
            num_scalar_prefetch=0,
            grid=grid,
            in_specs=[x_spec, w_spec, b_spec],
            out_specs=o_spec,
            scratch_shapes=[pltpu.VMEM((tm, tn), jnp.float32)],
        ),
        compiler_params=pltpu.CompilerParams(
            dimension_semantics=("parallel", "parallel", "arbitrary"),
            vmem_limit_bytes=vmem_limit,
        ),
        cost_estimate=cost,
    )(x2d, w, b2d)

    return out2d.reshape(B, T, N)


if __name__ == "__main__":
    # Small shapes consistent with Generator(n_embed, output_vocab_size)
    B, T, n_embed, vocab = 2, 8, 32, 256

    key = jax.random.PRNGKey(0)
    kx, kw, kb = jax.random.split(key, 3)

    # Deterministic synthetic params (mimics nn.Linear uniform(-1/sqrt(in), ...)).
    bound = 1.0 / (n_embed ** 0.5)
    x = jax.random.normal(kx, (B, T, n_embed), dtype=jnp.float32)
    weight = jax.random.uniform(kw, (vocab, n_embed), dtype=jnp.float32,
                                minval=-bound, maxval=bound)
    bias = jax.random.uniform(kb, (vocab,), dtype=jnp.float32,
                              minval=-bound, maxval=bound)

    y = generator_forward(x, weight, bias)
    jax.block_until_ready(y)

    # Reference check against plain JAX (same math as torch.nn.Linear).
    y_ref = x @ weight.T + bias
    assert y.shape == (B, T, vocab)
    assert jnp.allclose(y, y_ref, atol=1e-5, rtol=1e-5)

    print("KERNEL_OK")
</pallas_src>

<mosaic_0001>
module attributes {stable_mosaic.version = 11 : i64} {
  func.func @_linear_kernel(%arg0: i32, %arg1: i32, %arg2: i32, %arg3: memref<16x128xf32, #tpu.memory_space<vmem>>, %arg4: memref<256x128xf32, #tpu.memory_space<vmem>>, %arg5: memref<1x256xf32, #tpu.memory_space<vmem>>, %arg6: memref<16x256xf32, #tpu.memory_space<vmem>>, %arg7: memref<16x256xf32, #tpu.memory_space<vmem>>) attributes {dimension_semantics = [#tpu.dimension_semantics<parallel>, #tpu.dimension_semantics<parallel>, #tpu.dimension_semantics<arbitrary>], iteration_bounds = array<i64: 1, 1, 1>, scalar_prefetch = 0 : i64, scratch_operands = 1 : i64, tpu.core_type = #tpu.core_type<tc>, window_params = [{transform_indices = @transform_0, window_bounds = array<i64: 16, 128>}, {transform_indices = @transform_1, window_bounds = array<i64: 256, 128>}, {transform_indices = @transform_2, window_bounds = array<i64: 1, 256>}, {transform_indices = @transform_3, window_bounds = array<i64: 16, 256>}]} {
    %c0_i32 = arith.constant 0 : i32
    %0 = arith.cmpi eq, %arg2, %c0_i32 : i32
    %1 = arith.extui %0 : i1 to i32
    %c0_i32_0 = arith.constant 0 : i32
    %2 = arith.cmpi ne, %1, %c0_i32_0 : i32
    scf.if %2 {
      %cst_10 = arith.constant 0.000000e+00 : f32
      %12 = vector.broadcast %cst_10 : f32 to vector<16x256xf32>
      %c0_11 = arith.constant 0 : index
      %c0_12 = arith.constant 0 : index
      %13 = vector.load %arg7[%c0_11, %c0_12] : memref<16x256xf32, #tpu.memory_space<vmem>>, vector<16x256xf32>
      tpu.vector_store %arg7[%c0_11, %c0_12], %12 {strides = array<i32>} : memref<16x256xf32, #tpu.memory_space<vmem>>, vector<16x256xf32>,
    } else {
    }
    %c0 = arith.constant 0 : index
    %c0_1 = arith.constant 0 : index
    %3 = vector.load %arg7[%c0, %c0_1] : memref<16x256xf32, #tpu.memory_space<vmem>>, vector<16x256xf32>
    %c0_2 = arith.constant 0 : index
    %c0_3 = arith.constant 0 : index
    %4 = vector.load %arg3[%c0_2, %c0_3] : memref<16x128xf32, #tpu.memory_space<vmem>>, vector<16x128xf32>
    %c0_4 = arith.constant 0 : index
    %c0_5 = arith.constant 0 : index
    %5 = vector.load %arg4[%c0_4, %c0_5] : memref<256x128xf32, #tpu.memory_space<vmem>>, vector<256x128xf32>
    %cst = arith.constant dense<0.000000e+00> : vector<16x256xf32>
    %6 = tpu.matmul %4, %5, %cst {dimension_numbers = #tpu.dot_dimension_numbers<[1], [1], [0], [0], [0, 0, 1, 0], [], []>} : vector<16x128xf32>, vector<256x128xf32>, vector<16x256xf32> -> vector<16x256xf32>
    %7 = arith.addf %3, %6 : vector<16x256xf32>
    %c0_6 = arith.constant 0 : index
    %c0_7 = arith.constant 0 : index
    %8 = vector.load %arg7[%c0_6, %c0_7] : memref<16x256xf32, #tpu.memory_space<vmem>>, vector<16x256xf32>
    tpu.vector_store %arg7[%c0_6, %c0_7], %7 {strides = array<i32>} : memref<16x256xf32, #tpu.memory_space<vmem>>, vector<16x256xf32>,
    %c0_i32_8 = arith.constant 0 : i32
    %9 = arith.cmpi eq, %arg2, %c0_i32_8 : i32
    %10 = arith.extui %9 : i1 to i32
    %c0_i32_9 = arith.constant 0 : i32
    %11 = arith.cmpi ne, %10, %c0_i32_9 : i32
    scf.if %11 {
      %c0_10 = arith.constant 0 : index
      %c0_11 = arith.constant 0 : index
      %12 = vector.load %arg7[%c0_10, %c0_11] : memref<16x256xf32, #tpu.memory_space<vmem>>, vector<16x256xf32>
      %c0_12 = arith.constant 0 : index
      %c0_13 = arith.constant 0 : index
      %13 = vector.load %arg5[%c0_12, %c0_13] : memref<1x256xf32, #tpu.memory_space<vmem>>, vector<1x256xf32>
      %14 = vector.broadcast %13 : vector<1x256xf32> to vector<16x256xf32>
      %15 = arith.addf %12, %14 : vector<16x256xf32>
      %c0_14 = arith.constant 0 : index
      %c0_15 = arith.constant 0 : index
      %16 = vector.load %arg6[%c0_14, %c0_15] : memref<16x256xf32, #tpu.memory_space<vmem>>, vector<16x256xf32>
      tpu.vector_store %arg6[%c0_14, %c0_15], %15 {strides = array<i32>} : memref<16x256xf32, #tpu.memory_space<vmem>>, vector<16x256xf32>,
    } else {
    }
    return
  }
  func.func @transform_0(%arg0: i32, %arg1: i32, %arg2: i32) -> (i32, i32) {
    %c0_i32 = arith.constant 0 : i32
    return %arg1, %arg2 : i32, i32
  }
  func.func @transform_1(%arg0: i32, %arg1: i32, %arg2: i32) -> (i32, i32) {
    %c0_i32 = arith.constant 0 : i32
    return %arg0, %arg2 : i32, i32
  }
  func.func @transform_2(%arg0: i32, %arg1: i32, %arg2: i32) -> (i32, i32) {
    %c0_i32 = arith.constant 0 : i32
    %c0_i32_0 = arith.constant 0 : i32
    return %c0_i32, %arg0 : i32, i32
  }
  func.func @transform_3(%arg0: i32, %arg1: i32, %arg2: i32) -> (i32, i32) {
    %c0_i32 = arith.constant 0 : i32
    return %arg1, %arg0 : i32, i32
  }
}

</mosaic_0001>

<bundles_post_ra>
// kernel: tpu_custom_call.1
= control target key start
LH: loop header
LB: loop body
LE: loop exit
PB: predicated region body
PF: predicated region fallthrough
CT: control target
= control target key end

     0   :  { %8 = vsyncpa [#allocation4], 0  ;;  %s407_s0 = inlined_call_operand.hbm [shape: f32[16,128], index: 0, kind: input, shape index: {}]   ;;  %s408_s1 = inlined_call_operand.hbm [shape: f32[256,128], index: 1, kind: input, shape index: {}]   ;;  %s409_s2 = inlined_call_operand.vmem [shape: f32[1,256], index: 2, kind: input, shape index: {}]   ;;  %s410_s3 = inlined_call_operand.hbm [shape: f32[16,256], index: 3, kind: output, shape index: {}]  }
   0x1   :  { %9 = vsyncpa [#allocation7], 0 }
   0x2   :  { %10 = vsyncpa [#allocation5], 0  ;;  %s360_s12 = smov [#allocation3]  }
   0x3   :  { %s16_s13 = sshll.u32 %s360_s12, 4  ;;  %s17_s13 = int_to_ptr.vmem [resolvable:$true] %s16_s13 }
   0x4   :  { %s302_s14 = scalar_lea.vmem %s17_s13, 256  ;;  %p307_p1 = scmp.lt.s32.totalorder %s17_s13, %s17_s13 }
   0x5   :  { %p303_p0 = scmp.ne.s32.totalorder %s17_s13, %s302_s14  ;;  %p308_p2 = scmp.lt.s32.totalorder %s302_s14, %s302_s14 }
   0x7   :  { %p309_p3 = por %p308_p2, %p307_p1 }
   0x9   :  { %p310_p4 = pnand %p309_p3, %p303_p0 }
   0xb   :  { %313 = shalt.err (!%p310_p4)
}
   0xc   :  { %s361_s15 = smov 128   ;;  %s362_s16 = smov 8  }
   0xd   :  { %22 = dma.hbm_to_vmem [thread:$0]  %s407_s0, 256, %s17_s13, [#allocation4], %s361_s15, %s361_s15, %s362_s16  }
   0xe   :  { %s363_s19 = smov [#allocation6]  }
   0xf   :  { %s28_s20 = sshll.u32 %s363_s19, 4  ;;  %s29_s20 = int_to_ptr.vmem [resolvable:$true] %s28_s20 }
  0x10   :  { %s322_s21 = scalar_lea.vmem %s29_s20, 4096  ;;  %p327_p6 = scmp.lt.s32.totalorder %s29_s20, %s29_s20 }
  0x11   :  { %p323_p5 = scmp.ne.s32.totalorder %s29_s20, %s322_s21  ;;  %p328_p7 = scmp.lt.s32.totalorder %s322_s21, %s322_s21 }
  0x13   :  { %p329_p8 = por %p328_p7, %p327_p6 }
  0x15   :  { %p330_p9 = pnand %p329_p8, %p323_p5 }
  0x17   :  { %333 = shalt.err (!%p330_p9)
}
  0x18   :  { %34 = dma.hbm_to_vmem [thread:$0]  %s408_s1, 4096, %s29_s20, [#allocation7], %s361_s15, %s361_s15, %s362_s16  }
  0x19   :  { %354 = dma.done.wait [#allocation4], 256  }
  0x1a   :  { %355 = vsyncadd [#allocation4], 4294967040 }
  0x1b   :  { %356 = dma.done.wait [#allocation7], 4096  }
  0x1c   :  { %357 = vsyncadd [#allocation7], 4294963200  ;;  %v88_v0 = vld [vmem:[#allocation6 + $0xf8] sm:$0xff]  ;;  %v87_v2 = vld [vmem:[#allocation6 + $0xf0] sm:$0xff]  ;;  %v183_v34 = vlaneseq  ;;  %s364_s24 = smov [#allocation8]  }
  0x1d   :  { %v72_v1 = vld [vmem:[#allocation6 + $0x78] sm:$0xff]  ;;  %219 = vmatprep.subr.mxu0 %v88_v0  ;;  %255 = vmatprep.subr.mxu1 %v88_v0  ;;  %v71_v3 = vld [vmem:[#allocation6 + $0x70] sm:$0xff]  ;;  %v86_v4 = vld [vmem:[#allocation6 + $0xe8] sm:$0xff]  ;;  %s206_s25 = sshll.u32 %s364_s24, 4  ;;  %s207_s25 = int_to_ptr.vmem [resolvable:$true] %s206_s25 }
  0x1e   :  { %220 = vmatpush3.xpose.msra.mxu0 %v72_v1  ;;  %271 = vmatpush3.xpose.msra.mxu1 %v72_v1  ;;  %v70_v5 = vld [vmem:[#allocation6 + $0x68] sm:$0xff]  ;;  %v85_v6 = vld [vmem:[#allocation6 + $0xe0] sm:$0xff]  ;;  %v393_v7 = vld [vmem:[#allocation3] sm:$0xff]  ;;  %v184_v35 = vshrl.u32 %v183_v34, 7  ;;  %s334_s26 = scalar_lea.vmem %s207_s25, 512  ;;  %p339_p11 = scmp.lt.s32.totalorder %s207_s25, %s207_s25 }
  0x1f   :  { %221 = vmatprep.subr.mxu0 %v87_v2  ;;  %256 = vmatprep.subr.mxu1 %v87_v2  ;;  %v69_v8 = vld [vmem:[#allocation6 + $0x60] sm:$0xff]  ;;  %v395_v9 = vld [vmem:[#allocation3 + $0x8] sm:$0xff]  ;;  %v83_v12 = vld [vmem:[#allocation6 + $0xd0] sm:$0xff]  ;;  %p335_p10 = scmp.ne.s32.totalorder %s207_s25, %s334_s26  ;;  %p340_p12 = scmp.lt.s32.totalorder %s334_s26, %s334_s26 }
  0x20   :  { %v84_v10 = vld [vmem:[#allocation6 + $0xd8] sm:$0xff]  ;;  %251 = vmatprep.mubr.f32.mxu0 %v393_v7  ;;  %253 = vmatprep.mubr.f32.mxu1 %v395_v9  ;;  %v67_v13 = vld [vmem:[#allocation6 + $0x50] sm:$0xff]  ;;  %v82_v14 = vld [vmem:[#allocation6 + $0xc8] sm:$0xff]  ;;  %v185_v36 = vsub.s32 0, %v184_v35  ;;  %v189_v38 = vsub.s32 1, %v184_v35 }
  0x21   :  { %v68_v11 = vld [vmem:[#allocation6 + $0x58] sm:$0xff]  ;;  %v66_v15 = vld [vmem:[#allocation6 + $0x48] sm:$0xff]  ;;  %v81_v16 = vld [vmem:[#allocation6 + $0xc0] sm:$0xff]  ;;  %p341_p13 = por %p340_p12, %p339_p11 }
  0x22   :  { %222 = vmatpush3.xpose.msra.mxu0 %v71_v3  ;;  %272 = vmatpush3.xpose.msra.mxu1 %v71_v3  ;;  %v65_v17 = vld [vmem:[#allocation6 + $0x40] sm:$0xff]  ;;  %v80_v18 = vld [vmem:[#allocation6 + $0xb8] sm:$0xff]  ;;  %v79_v20 = vld [vmem:[#allocation6 + $0xb0] sm:$0xff] }
  0x23   :  { %223 = vmatprep.subr.mxu0 %v86_v4  ;;  %257 = vmatprep.subr.mxu1 %v86_v4  ;;  %v64_v19 = vld [vmem:[#allocation6 + $0x38] sm:$0xff]  ;;  %v63_v21 = vld [vmem:[#allocation6 + $0x30] sm:$0xff]  ;;  %v78_v22 = vld [vmem:[#allocation6 + $0xa8] sm:$0xff]  ;;  %p342_p0 = pnand %p341_p13, %p335_p10 }
  0x24   :  { %v62_v23 = vld [vmem:[#allocation6 + $0x28] sm:$0xff]  ;;  %v77_v24 = vld [vmem:[#allocation6 + $0xa0] sm:$0xff]  ;;  %v76_v26 = vld [vmem:[#allocation6 + $0x98] sm:$0xff] }
  0x25   :  { %v61_v25 = vld [vmem:[#allocation6 + $0x20] sm:$0xff]  ;;  %v60_v27 = vld [vmem:[#allocation6 + $0x18] sm:$0xff]  ;;  %v75_v28 = vld [vmem:[#allocation6 + $0x90] sm:$0xff] }
  0x26   :  { %224 = vmatpush3.xpose.msra.mxu0 %v70_v5  ;;  %273 = vmatpush3.xpose.msra.mxu1 %v70_v5  ;;  %v59_v29 = vld [vmem:[#allocation6 + $0x10] sm:$0xff]  ;;  %v74_v30 = vld [vmem:[#allocation6 + $0x88] sm:$0xff]  ;;  %v73_v32 = vld [vmem:[#allocation6 + $0x80] sm:$0xff] }
  0x27   :  { %225 = vmatprep.subr.mxu0 %v85_v6  ;;  %258 = vmatprep.subr.mxu1 %v85_v6  ;;  %v58_v31 = vld [vmem:[#allocation6 + $0x8] sm:$0xff]  ;;  %v57_v33 = vld [vmem:[#allocation6] sm:$0xff]  ;;  %v181_v37 = vld [vmem:[%s409_s2] sm:$0x3] }
  0x28   :  { %v186_v39 = vrot.slane %v181_v37, %v185_v36  ;;  %v190_v40 = vrot.slane %v181_v37, %v189_v38 }
  0x2a   :  { %226 = vmatpush3.xpose.msra.mxu0 %v69_v8  ;;  %274 = vmatpush3.xpose.msra.mxu1 %v69_v8 }
  0x2b   :  { %227 = vmatprep.subr.mxu0 %v84_v10  ;;  %259 = vmatprep.subr.mxu1 %v84_v10 }
  0x2e   :  { %228 = vmatpush3.xpose.msra.mxu0 %v68_v11  ;;  %275 = vmatpush3.xpose.msra.mxu1 %v68_v11 }
  0x2f   :  { %229 = vmatprep.subr.mxu0 %v83_v12  ;;  %260 = vmatprep.subr.mxu1 %v83_v12 }
  0x32   :  { %230 = vmatpush3.xpose.msra.mxu0 %v67_v13  ;;  %276 = vmatpush3.xpose.msra.mxu1 %v67_v13 }
  0x33   :  { %231 = vmatprep.subr.mxu0 %v82_v14  ;;  %261 = vmatprep.subr.mxu1 %v82_v14 }
  0x36   :  { %232 = vmatpush3.xpose.msra.mxu0 %v66_v15  ;;  %277 = vmatpush3.xpose.msra.mxu1 %v66_v15 }
  0x37   :  { %233 = vmatprep.subr.mxu0 %v81_v16  ;;  %262 = vmatprep.subr.mxu1 %v81_v16 }
  0x3a   :  { %234 = vmatpush3.xpose.msra.mxu0 %v65_v17  ;;  %278 = vmatpush3.xpose.msra.mxu1 %v65_v17 }
  0x3b   :  { %235 = vmatprep.subr.mxu0 %v80_v18  ;;  %263 = vmatprep.subr.mxu1 %v80_v18 }
  0x3e   :  { %236 = vmatpush3.xpose.msra.mxu0 %v64_v19  ;;  %279 = vmatpush3.xpose.msra.mxu1 %v64_v19 }
  0x3f   :  { %237 = vmatprep.subr.mxu0 %v79_v20  ;;  %264 = vmatprep.subr.mxu1 %v79_v20 }
  0x42   :  { %238 = vmatpush3.xpose.msra.mxu0 %v63_v21  ;;  %280 = vmatpush3.xpose.msra.mxu1 %v63_v21 }
  0x43   :  { %239 = vmatprep.subr.mxu0 %v78_v22  ;;  %265 = vmatprep.subr.mxu1 %v78_v22 }
  0x46   :  { %240 = vmatpush3.xpose.msra.mxu0 %v62_v23  ;;  %281 = vmatpush3.xpose.msra.mxu1 %v62_v23 }
  0x47   :  { %241 = vmatprep.subr.mxu0 %v77_v24  ;;  %266 = vmatprep.subr.mxu1 %v77_v24 }
  0x4a   :  { %242 = vmatpush3.xpose.msra.mxu0 %v61_v25  ;;  %282 = vmatpush3.xpose.msra.mxu1 %v61_v25 }
  0x4b   :  { %243 = vmatprep.subr.mxu0 %v76_v26  ;;  %267 = vmatprep.subr.mxu1 %v76_v26 }
  0x4e   :  { %244 = vmatpush3.xpose.msra.mxu0 %v60_v27  ;;  %283 = vmatpush3.xpose.msra.mxu1 %v60_v27 }
  0x4f   :  { %245 = vmatprep.subr.mxu0 %v75_v28  ;;  %268 = vmatprep.subr.mxu1 %v75_v28 }
  0x52   :  { %246 = vmatpush3.xpose.msra.mxu0 %v59_v29  ;;  %284 = vmatpush3.xpose.msra.mxu1 %v59_v29 }
  0x53   :  { %247 = vmatprep.subr.mxu0 %v74_v30  ;;  %269 = vmatprep.subr.mxu1 %v74_v30 }
  0x56   :  { %248 = vmatpush3.xpose.msra.mxu0 %v58_v31  ;;  %285 = vmatpush3.xpose.msra.mxu1 %v58_v31 }
  0x57   :  { %249 = vmatprep.subr.mxu0 %v73_v32  ;;  %270 = vmatprep.subr.mxu1 %v73_v32 }
  0x5a   :  { %250 = vmatpush3.xpose.msra.mxu0 %v57_v33  ;;  %286 = vmatpush3.xpose.msra.mxu1 %v57_v33 }
  0x5d   :  { %252 = vmatmul.mubr.f32.vlgmr.msra.gmra.mxu0 %v393_v7  ;;  %254 = vmatmul.mubr.f32.vlgmr.msra.gmra.mxu1 %v395_v9 }
 0x11d   :  { %v155_v41 = vpop.f32.mrf.mxu0  ;;  %v161_v42 = vpop.f32.mrf.mxu1 }
 0x11e   :  { %v193_v43 = vadd.f32 %v186_v39, %v155_v41  ;;  %v195_v44 = vadd.f32 %v186_v39, %v161_v42 }
 0x11f   :  { %v157_v45 = vpop.f32.mrf.mxu0  ;;  %v163_v46 = vpop.f32.mrf.mxu1 }
 0x120   :  { %197 = vst [vmem:[#allocation8] sm:$0xff] %v193_v43  ;;  %199 = vst [vmem:[#allocation8 + $0x10] sm:$0xff] %v195_v44  ;;  %v194_v47 = vadd.f32 %v190_v40, %v157_v45  ;;  %v196_v48 = vadd.f32 %v190_v40, %v163_v46 }
 0x122   :  { %198 = vst [vmem:[#allocation8 + $0x8] sm:$0xff] %v194_v47  ;;  %200 = vst [vmem:[#allocation8 + $0x18] sm:$0xff] %v196_v48 }
 0x123   :  { %345 = shalt.err (!%p342_p0)
}
 0x124   :  { %s365_s2 = smov 256   ;;  %s366_s27 = smov 16  }
 0x125   :  { %212 = dma.vmem_to_hbm [thread:$0]  %s207_s25, 512, %s410_s3, [#allocation5], %s365_s2, %s365_s2, %s366_s27  }
 0x126   :  { %358 = dma.done.wait [#allocation5], 512  }
 0x127   :  { %359 = vsyncadd [#allocation5], 4294966784 }
 0x128   :  { %216 = vsyncpa [#allocation4], 1 }
 0x129   :  { %217 = vsyncpa [#allocation7], 1 }
 0x12a   :  { %218 = vsyncpa [#allocation5], 1 }

</bundles_post_ra>
